<compile_context>
chip_gen: v7x
topology: tpu7x:2x2x1
jax: 0.10.0
libtpu: 0.0.40
codegen_flags: <defaults>
</compile_context>

<pallas_src>
import functools

import jax
import jax.numpy as jnp
from jax import lax
from jax.experimental import pallas as pl
from jax.experimental.pallas import tpu as pltpu


def _round_up(x, m):
    return (x + m - 1) // m * m


# ---------------------------------------------------------------------------
# Kernel: one batch tile.
#   xin = [noise | onehot(label) | 1.0 | 0...]          (one compare + add)
#   h   = leaky_relu(xin @ W_all)                       (single MXU dot, bias folded in)
#   out = tanh(h @ W2 + b2)
# ---------------------------------------------------------------------------
def _generator_kernel(label_ref, x_ref, wall_ref, w2_ref, b2_ref, out_ref, *, noise_dim):
    wdt = wall_ref.dtype
    tb, in_p = x_ref.shape

    # One-hot(label) generated directly at lane offset noise_dim; x's lanes in that
    # region are zero and the one-hot's other lanes are zero, so a plain add combines
    # noise, embedding selector and the host-set bias-lane 1.0 into one MXU operand.
    iota = lax.broadcasted_iota(jnp.int32, (tb, in_p), 1)
    onehot = (iota == (label_ref[...] + noise_dim)).astype(wdt)        # (tb, in_p)
    xin = x_ref[...].astype(wdt) + onehot                              # (tb, in_p)

    # Layer 1 (noise-Linear, embedding and bias all folded into W_all).
    h = jnp.dot(xin, wall_ref[...], preferred_element_type=jnp.float32)  # (tb, hidden_p) f32
    h = jnp.where(h > 0, h, 0.2 * h)                                   # LeakyReLU(0.2), f32 VPU

    # Layer 2 + Tanh.
    o = (jnp.dot(h.astype(wdt), w2_ref[...], preferred_element_type=jnp.float32)
         + b2_ref[...].astype(jnp.float32))                            # (tb, data_p) f32
    out_ref[...] = jnp.tanh(o)


# ---------------------------------------------------------------------------
# Host-side weight fusion + lane/sublane padding (done once; weights are static).
# ---------------------------------------------------------------------------
def prepare_fused_params(params, *, vt, noise_dim, use_bf16=True):
    hidden = params["w1"].shape[1]
    data_dim = params["w2"].shape[1]
    class_size = params["emb"].shape[0]

    hidden_p = _round_up(hidden, 128)        # 500 -> 512 (lane-dense h)
    data_p = _round_up(data_dim, 128)        # 64  -> 128 (unmasked output stores)
    class_p = _round_up(class_size, 8)       # 10  -> 16  (guard band before the bias row)
    bias_lane = noise_dim + class_p          # lane carrying the constant 1.0
    in_p = _round_up(bias_lane + 1, 64)      # 49  -> 64  (combined operand width)

    w1_top = params["w1"][:noise_dim, :]     # (noise_dim, hidden)
    w1_bot = params["w1"][noise_dim:, :]     # (label_dim, hidden)

    if vt:
        wf = w1_top
        bf = params["b1"]
    else:
        # Fold the noise Linear into Linear#1:  (x@wn + bn)@W1t = x@(wn@W1t) + bn@W1t
        wf = params["wn"] @ w1_top
        bf = params["bn"] @ w1_top + params["b1"]
    ef = params["emb"] @ w1_bot              # embedding folded into Linear#1

    # Stack [wf ; ef ; bf] into a single layer-1 weight (bias picked up by the 1.0 lane).
    w_all = jnp.zeros((in_p, hidden_p), jnp.float32)
    w_all = w_all.at[:noise_dim, :hidden].set(wf)
    w_all = w_all.at[noise_dim:noise_dim + class_size, :hidden].set(ef)
    w_all = w_all.at[bias_lane, :hidden].set(bf.reshape(-1))

    w2 = jnp.zeros((hidden_p, data_p), jnp.float32).at[:hidden, :data_dim].set(params["w2"])
    b2 = jnp.zeros((1, data_p), jnp.float32).at[:, :data_dim].set(params["b2"])

    wdt = jnp.bfloat16 if use_bf16 else jnp.float32   # bf16 is MXU-native on v5e/v6e/v7x
    return {
        "w_all": w_all.astype(wdt),
        "w2": w2.astype(wdt),
        "b2": b2,                            # added post-MXU in f32 on the VPU
        "noise_dim": noise_dim,
        "bias_lane": bias_lane,
        "in_p": in_p,
        "data_dim": data_dim,
    }


# ---------------------------------------------------------------------------
# Wrapper: coarse batch grid (<=2 steps for B up to 4096), weights resident.
# ---------------------------------------------------------------------------
def generator_forward(fused, noise, label, *, max_block_b=2048):
    B = noise.shape[0]
    noise_dim = fused["noise_dim"]
    in_p = fused["in_p"]
    bias_lane = fused["bias_lane"]
    data_p = fused["w2"].shape[1]
    data_dim = fused["data_dim"]

    # Two grid steps keep both v7x TensorCores busy (batch axis is "parallel"); the extra
    # step costs ~0.35 us on single-core v5e/v6e. Tile capped at 2048 rows (~6-8 MiB of
    # per-tile VMEM incl. double buffers — inside every generation's scoped default).
    target_steps = 2 if B >= 16 else 1
    tb = _round_up(pl.cdiv(B, target_steps), 8)        # sublane-aligned batch tile
    tb = min(tb, _round_up(max_block_b, 8))
    nsteps = pl.cdiv(B, tb)
    bp = tb * nsteps                                   # == B whenever B % 8 == 0

    # Combined layer-1 operand: lanes [0:noise_dim]=noise, one-hot region left zero
    # (filled in-kernel), lane bias_lane = 1.0 (bias row selector), rest zero.
    x_p = jnp.zeros((bp, in_p), jnp.float32)
    x_p = x_p.at[:B, :noise_dim].set(noise.astype(jnp.float32))
    x_p = x_p.at[:, bias_lane].set(1.0)

    label2d = label.reshape(B, 1).astype(jnp.int32)
    if bp == B:
        label_p = label2d                               # no batch-padding copy
    else:
        label_p = jnp.zeros((bp, 1), jnp.int32).at[:B].set(label2d)

    # Constant index_map -> grid-invariant block: weights stay resident in VMEM.
    def weight_spec(shape):
        return pl.BlockSpec(shape, lambda i: (0,) * len(shape))

    kernel = functools.partial(_generator_kernel, noise_dim=noise_dim)

    out = pl.pallas_call(
        kernel,
        out_shape=jax.ShapeDtypeStruct((bp, data_p), jnp.float32),
        grid=(nsteps,),
        in_specs=[
            pl.BlockSpec((tb, 1), lambda i: (i, 0)),        # label
            pl.BlockSpec((tb, in_p), lambda i: (i, 0)),     # combined operand (noise+bias lane)
            weight_spec(fused["w_all"].shape),
            weight_spec(fused["w2"].shape),
            weight_spec(fused["b2"].shape),
        ],
        out_specs=pl.BlockSpec((tb, data_p), lambda i: (i, 0)),
        compiler_params=pltpu.CompilerParams(
            dimension_semantics=("parallel",)),             # shards batch tiles across v7x TCs
    )(label_p, x_p, fused["w_all"], fused["w2"], fused["b2"])

    out = out[:, :data_dim]
    if bp != B:
        out = out[:B]
    return out


# ---------------------------------------------------------------------------
# Pure-JAX reference (unfused, mirrors the PyTorch forward exactly).
# ---------------------------------------------------------------------------
def _ref_forward(params, noise, label, *, vt=False):
    x = noise
    if not vt:
        x = x @ params["wn"] + params["bn"]
    emb = params["emb"][label.reshape(-1)]            # Embedding + squeeze(1)
    x = jnp.concatenate([x, emb], axis=1)
    h = x @ params["w1"] + params["b1"]
    h = jnp.where(h > 0, h, 0.2 * h)                  # LeakyReLU(0.2)
    return jnp.tanh(h @ params["w2"] + params["b2"])  # Linear(500, data_dim) + Tanh


def make_params(key, *, noise_dim, label_dim, data_dim, class_size, hidden=500):
    # Deterministic synthetic init. NOTE: the original module's weights_init sets Linear
    # weights to 1.0 / biases to 0 when vt=False; we use small random values so the tanh
    # output is numerically non-degenerate for testing.
    ks = jax.random.split(key, 6)
    s = 0.05
    return {
        "emb": s * jax.random.normal(ks[0], (class_size, label_dim), jnp.float32),
        "wn":  s * jax.random.normal(ks[1], (noise_dim, noise_dim), jnp.float32),
        "bn":  jnp.zeros((1, noise_dim), jnp.float32),
        "w1":  s * jax.random.normal(ks[2], (noise_dim + label_dim, hidden), jnp.float32),
        "b1":  s * jax.random.normal(ks[3], (1, hidden), jnp.float32),
        "w2":  s * jax.random.normal(ks[4], (hidden, data_dim), jnp.float32),
        "b2":  s * jax.random.normal(ks[5], (1, data_dim), jnp.float32),
    }


if __name__ == "__main__":
    B = 160            # -> 2 grid steps of 80 rows each (no batch padding)
    noise_dim = 32     # args.noise_dim
    label_dim = 16     # args.label_dim
    data_dim = 64      # args.data_dim
    class_size = 10
    vt = False         # exercise the full path including the fused self.noise Linear

    key = jax.random.PRNGKey(0)
    k_noise, k_label, k_params = jax.random.split(key, 3)

    params = make_params(k_params, noise_dim=noise_dim, label_dim=label_dim,
                         data_dim=data_dim, class_size=class_size)
    noise = jax.random.normal(k_noise, (B, noise_dim), jnp.float32)
    label = jax.random.randint(k_label, (B, 1), 0, class_size, jnp.int32)

    use_bf16 = True    # bf16 MXU operands on all generations; f32 accumulation/elementwise
    fused = prepare_fused_params(params, vt=vt, noise_dim=noise_dim, use_bf16=use_bf16)

    out = generator_forward(fused, noise, label)
    out = jax.block_until_ready(out)

    ref = _ref_forward(params, noise, label, vt=vt)
    assert out.shape == (B, data_dim)
    tol = 2e-2 if use_bf16 else 1e-5   # post-tanh outputs in [-1,1]; bf16 operands
    assert jnp.allclose(out, ref, atol=tol, rtol=0.0), "mismatch vs JAX reference"

    print("KERNEL_OK")
</pallas_src>

<mosaic_0001>
module attributes {stable_mosaic.version = 11 : i64} {
  func.func @_generator_kernel(%arg0: i32, %arg1: memref<80x1xi32, #tpu.memory_space<vmem>>, %arg2: memref<80x64xf32, #tpu.memory_space<vmem>>, %arg3: memref<64x512xbf16, #tpu.memory_space<vmem>>, %arg4: memref<512x128xbf16, #tpu.memory_space<vmem>>, %arg5: memref<1x128xf32, #tpu.memory_space<vmem>>, %arg6: memref<80x128xf32, #tpu.memory_space<vmem>>) attributes {dimension_semantics = [#tpu.dimension_semantics<parallel>], iteration_bounds = array<i64: 2>, scalar_prefetch = 0 : i64, scratch_operands = 0 : i64, tpu.core_type = #tpu.core_type<tc>, window_params = [{transform_indices = @transform_0, window_bounds = array<i64: 80, 1>}, {transform_indices = @transform_1, window_bounds = array<i64: 80, 64>}, {pipeline_mode = #tpu.pipeline_mode<synchronous>, transform_indices = @transform_2, window_bounds = array<i64: 64, 512>}, {pipeline_mode = #tpu.pipeline_mode<synchronous>, transform_indices = @transform_3, window_bounds = array<i64: 512, 128>}, {pipeline_mode = #tpu.pipeline_mode<synchronous>, transform_indices = @transform_4, window_bounds = array<i64: 1, 128>}, {transform_indices = @transform_5, window_bounds = array<i64: 80, 128>}]} {
    %0 = tpu.iota {dimensions = array<i32: 1>} : vector<80x64xi32>
    %c0 = arith.constant 0 : index
    %c0_0 = arith.constant 0 : index
    %1 = vector.load %arg1[%c0, %c0_0] : memref<80x1xi32, #tpu.memory_space<vmem>>, vector<80x1xi32>
    %c32_i32 = arith.constant 32 : i32
    %2 = vector.broadcast %c32_i32 : i32 to vector<80x1xi32>
    %3 = arith.addi %1, %2 : vector<80x1xi32>
    %4 = vector.broadcast %3 : vector<80x1xi32> to vector<80x64xi32>
    %5 = arith.cmpi eq, %0, %4 : vector<80x64xi32>
    %6 = arith.extui %5 : vector<80x64xi1> to vector<80x64xi32>
    %7 = arith.sitofp %6 : vector<80x64xi32> to vector<80x64xf32>
    %8 = arith.truncf %7 : vector<80x64xf32> to vector<80x64xbf16>
    %c0_1 = arith.constant 0 : index
    %c0_2 = arith.constant 0 : index
    %9 = vector.load %arg2[%c0_1, %c0_2] : memref<80x64xf32, #tpu.memory_space<vmem>>, vector<80x64xf32>
    %10 = arith.truncf %9 : vector<80x64xf32> to vector<80x64xbf16>
    %11 = arith.addf %10, %8 : vector<80x64xbf16>
    %c0_3 = arith.constant 0 : index
    %c0_4 = arith.constant 0 : index
    %12 = vector.load %arg3[%c0_3, %c0_4] : memref<64x512xbf16, #tpu.memory_space<vmem>>, vector<64x512xbf16>
    %cst = arith.constant dense<0.000000e+00> : vector<80x512xf32>
    %13 = tpu.matmul %11, %12, %cst {dimension_numbers = #tpu.dot_dimension_numbers<[1], [0], [0], [1], [0, 0, 1, 1], [], []>} : vector<80x64xbf16>, vector<64x512xbf16>, vector<80x512xf32> -> vector<80x512xf32>
    %cst_5 = arith.constant 0.000000e+00 : f32
    %14 = vector.broadcast %cst_5 : f32 to vector<80x512xf32>
    %15 = arith.cmpf ogt, %13, %14 : vector<80x512xf32>
    %cst_6 = arith.constant 2.000000e-01 : f32
    %16 = vector.broadcast %cst_6 : f32 to vector<80x512xf32>
    %17 = arith.mulf %16, %13 : vector<80x512xf32>
    %18 = arith.select %15, %13, %17 : vector<80x512xi1>, vector<80x512xf32>
    %19 = arith.truncf %18 : vector<80x512xf32> to vector<80x512xbf16>
    %c0_7 = arith.constant 0 : index
    %c0_8 = arith.constant 0 : index
    %20 = vector.load %arg4[%c0_7, %c0_8] : memref<512x128xbf16, #tpu.memory_space<vmem>>, vector<512x128xbf16>
    %cst_9 = arith.constant dense<0.000000e+00> : vector<80x128xf32>
    %21 = tpu.matmul %19, %20, %cst_9 {dimension_numbers = #tpu.dot_dimension_numbers<[1], [0], [0], [1], [0, 0, 1, 1], [], []>} : vector<80x512xbf16>, vector<512x128xbf16>, vector<80x128xf32> -> vector<80x128xf32>
    %c0_10 = arith.constant 0 : index
    %c0_11 = arith.constant 0 : index
    %22 = vector.load %arg5[%c0_10, %c0_11] : memref<1x128xf32, #tpu.memory_space<vmem>>, vector<1x128xf32>
    %23 = vector.broadcast %22 : vector<1x128xf32> to vector<80x128xf32>
    %24 = arith.addf %21, %23 : vector<80x128xf32>
    %25 = math.tanh %24 : vector<80x128xf32>
    %c0_12 = arith.constant 0 : index
    %c0_13 = arith.constant 0 : index
    %26 = vector.load %arg6[%c0_12, %c0_13] : memref<80x128xf32, #tpu.memory_space<vmem>>, vector<80x128xf32>
    tpu.vector_store %arg6[%c0_12, %c0_13], %25 {strides = array<i32>} : memref<80x128xf32, #tpu.memory_space<vmem>>, vector<80x128xf32>,
    return
  }
  func.func @transform_0(%arg0: i32) -> (i32, i32) {
    %c0_i32 = arith.constant 0 : i32
    %c0_i32_0 = arith.constant 0 : i32
    return %arg0, %c0_i32 : i32, i32
  }
  func.func @transform_1(%arg0: i32) -> (i32, i32) {
    %c0_i32 = arith.constant 0 : i32
    %c0_i32_0 = arith.constant 0 : i32
    return %arg0, %c0_i32 : i32, i32
  }
  func.func @transform_2(%arg0: i32) -> (i32, i32) {
    %c0_i32 = arith.constant 0 : i32
    %c0_i32_0 = arith.constant 0 : i32
    %c0_i32_1 = arith.constant 0 : i32
    return %c0_i32, %c0_i32_0 : i32, i32
  }
  func.func @transform_3(%arg0: i32) -> (i32, i32) {
    %c0_i32 = arith.constant 0 : i32
    %c0_i32_0 = arith.constant 0 : i32
    %c0_i32_1 = arith.constant 0 : i32
    return %c0_i32, %c0_i32_0 : i32, i32
  }
  func.func @transform_4(%arg0: i32) -> (i32, i32) {
    %c0_i32 = arith.constant 0 : i32
    %c0_i32_0 = arith.constant 0 : i32
    %c0_i32_1 = arith.constant 0 : i32
    return %c0_i32, %c0_i32_0 : i32, i32
  }
  func.func @transform_5(%arg0: i32) -> (i32, i32) {
    %c0_i32 = arith.constant 0 : i32
    %c0_i32_0 = arith.constant 0 : i32
    return %arg0, %c0_i32 : i32, i32
  }
}

</mosaic_0001>

<bundles_post_ra>
// kernel: tpu_custom_call.1
= control target key start
LH: loop header
LB: loop body
LE: loop exit
PB: predicated region body
PF: predicated region fallthrough
CT: control target
= control target key end

     0   :  { %10 = vsyncpa [#allocation3], 0  ;;  %s2049_s0 = inlined_call_operand.vmem [shape: s32[160,1], index: 0, kind: input, shape index: {}]   ;;  %s2050_s1 = inlined_call_operand.vmem [shape: f32[160,64], index: 1, kind: input, shape index: {}]   ;;  %s2051_s2 = inlined_call_operand.vmem [shape: bf16[64,512], index: 2, kind: input, shape index: {}]   ;;  %s2052_s3 = inlined_call_operand.vmem [shape: bf16[512,128], index: 3, kind: input, shape index: {}]   ;;  %s2053_s4 = inlined_call_operand.vmem [shape: f32[1,128], index: 4, kind: input, shape index: {}]   ;;  %s2054_s5 = inlined_call_operand.hbm [shape: f32[160,128], index: 5, kind: output, shape index: {}]  }
   0x1   :  { %12 = vsyncpa [#allocation3 + $0x1], 0  ;;  %s1683_s18 = smov 0   ;;  %s1685_s19 = smov 0  }
   0x2   :  { %s1687_s20 = smov 0   ;;  %s1689_s21 = smov 0  }
   0x3 LB: > { %s1704_s22 = sadd.s32 4294967295, %s1646_s21   ;;  %s1291_s23 = sadd.s32 4294967294, %s1646_s21   ;;  %s1646_s21 = sphi %s1689_s21, %s2060_s21   ;;  %s1642_s20 = sphi %s1687_s20, %s2059_s20   ;;  %s1638_s19 = sphi %s1685_s19, %s2058_s19   ;;  %s1634_s18 = sphi %s1683_s18, %s2057_s18  }
   0x4   : > { %s1708_s24 = sadd.s32 1, %s1646_s21   ;;  %s140_s25 = sadd.s32 1, %s1642_s20 }
   0x5   : > { %s137_s26 = ssub.s32 %s1646_s21, %s1708_s24  ;;  %p150_p0 = scmp.ne.s32.totalorder %s1642_s20, %s1638_s19 }
   0x6   : > { %p138_p1 = scmp.eq.s32.totalorder %s137_s26, 0  ;;  %p151_p2 = scmp.eq.s32.totalorder %s1704_s22, 1 }
   0x7   : > { %p156_p3 = scmp.ne.s32.totalorder %s1638_s19, %s1634_s18  ;;  %p157_p4 = scmp.eq.s32.totalorder %s1291_s23, 1 }
   0x8   : > { %s1719_s27 = scalar_select %p138_p1, %s1642_s20, %s140_s25  }
   0x9   : > { %p1721_p5 = por %p151_p2, %p150_p0  ;;  %p1725_p6 = por %p157_p4, %p156_p3 }
   0xa   : > { %p1294_p7 = scmp.ge.s32.totalorder %s1646_s21, 1  ;;  %p202_p8 = scmp.lt.s32.totalorder %s1646_s21, 3 }
   0xc   : > { %p203_p9 = pnand %p1294_p7, %p202_p8 }
   0xd   : > { %s235_s30 = smul.u32 (!%p203_p9), 10, %s1704_s22  ;;  %v1508_v0 = vld [vmem:[%s2051_s2 + $0x4] ss:$16 sps:$4 sm:$0xff] (!%p203_p9)   ;;  %v1648_v1 = vmov (!%p203_p9), 0   ;;  %v1510_v2 = vld [vmem:[%s2051_s2 + $0xc] ss:$16 sps:$4 sm:$0xff] (!%p203_p9)   ;;  %v249_v39 = vlaneseq (!%p203_p9) }
   0xe   : > { %206 = sbr.rel (%p203_p9) target bundleno = 668 (0x29c), region = 40  ;;  %1507 = vset.pattern.permute.xlu1 (!%p203_p9), %v1648_v1  ;;  %1506 = vset.pattern.permute.xlu0 (!%p203_p9), %v1648_v1  ;;  %v1512_v3 = vld [vmem:[%s2051_s2] ss:$16 sps:$4 sm:$0xff] (!%p203_p9)   ;;  %v1513_v4 = vld [vmem:[%s2051_s2 + $0x8] ss:$16 sps:$4 sm:$0xff] (!%p203_p9)   ;;  %v1649_v47 = vmov (!%p203_p9), 0.0  }
   0xf   : > { %p236_p10 = scmp.lt.s32.totalorder (!%p203_p9), %s235_s30, 19  ;;  %468 = vmatprep.subr.bf16.mxu0 (!%p203_p9), %v1508_v0  ;;  %500 = vmatprep.mubr.bf16.mxu0 (!%p203_p9), %v1648_v1  ;;  %v1514_v5 = vld [vmem:[%s2051_s2 + $0x24] ss:$16 sps:$4 sm:$0xff] (!%p203_p9)   ;;  %v1516_v6 = vld [vmem:[%s2051_s2 + $0x2c] ss:$16 sps:$4 sm:$0xff] (!%p203_p9)   ;;  %v1817_v40 = vand.u32 (!%p203_p9), 127, %v249_v39 }
  0x10   : > { %551 = vmatprep.subr.bf16.mxu1 (!%p203_p9), %v1510_v2  ;;  %583 = vmatprep.mubr.bf16.mxu1 (!%p203_p9), %v1648_v1  ;;  %v1518_v7 = vld [vmem:[%s2051_s2 + $0x20] ss:$16 sps:$4 sm:$0xff] (!%p203_p9)   ;;  %v1519_v8 = vld [vmem:[%s2051_s2 + $0x28] ss:$16 sps:$4 sm:$0xff] (!%p203_p9)   ;;  %v1520_v19 = vld [vmem:[%s2051_s2 + $0x44] ss:$16 sps:$4 sm:$0xff] (!%p203_p9)  }
  0x11   : > { %469 = vmatpush1.bf16.msra.mxu0 (!%p203_p9), %v1512_v3  ;;  %552 = vmatpush1.bf16.msra.mxu1 (!%p203_p9), %v1513_v4  ;;  %v1522_v22 = vld [vmem:[%s2051_s2 + $0x4c] ss:$16 sps:$4 sm:$0xff] (!%p203_p9)   ;;  %v1524_v23 = vld [vmem:[%s2051_s2 + $0x40] ss:$16 sps:$4 sm:$0xff] (!%p203_p9)   ;;  %v1525_v26 = vld [vmem:[%s2051_s2 + $0x48] ss:$16 sps:$4 sm:$0xff] (!%p203_p9)  }
  0x12   : > { %470 = vmatprep.subr.bf16.mxu0 (!%p203_p9), %v1514_v5  ;;  %553 = vmatprep.subr.bf16.mxu1 (!%p203_p9), %v1516_v6  ;;  %v1526_v27 = vld [vmem:[%s2051_s2 + $0x64] ss:$16 sps:$4 sm:$0xff] (!%p203_p9)   ;;  %v1528_v28 = vld [vmem:[%s2051_s2 + $0x6c] ss:$16 sps:$4 sm:$0xff] (!%p203_p9)   ;;  %v1530_v33 = vld [vmem:[%s2051_s2 + $0x60] ss:$16 sps:$4 sm:$0xff] (!%p203_p9)  }
  0x13   : > { %v1531_v34 = vld [vmem:[%s2051_s2 + $0x68] ss:$16 sps:$4 sm:$0xff] (!%p203_p9)   ;;  %v1532_v37 = vld [vmem:[%s2052_s3 + $0x40] sm:$0xff] (!%p203_p9)   ;;  %vm452_vm4 = vcmask (!%p203_p9), 523264   ;;  %v1540_v4 = vld [vmem:[%s2052_s3 + $0x50] sm:$0xff] (!%p203_p9)   ;;  %s1369_s6 = smul.u32 (!%p203_p9), 1280, %s1704_s22 }
  0x14   : > { %v1534_v38 = vld [vmem:[%s2052_s3 + $0xc0] sm:$0xff] (!%p203_p9)   ;;  %v1536_v59 = vld [vmem:[%s2052_s3 + $0x48] sm:$0xff] (!%p203_p9)   ;;  %v1542_v5 = vld [vmem:[%s2052_s3 + $0xd0] sm:$0xff] (!%p203_p9)   ;;  %s1650_s22 = smov (!%p203_p9), [#allocation2]  }
  0x15   : > { %s2062_s30 = smov (!%p236_p10, %s235_s30), 19  ;;  %471 = vmatpush1.bf16.msra.mxu0 %v1518_v7  ;;  %554 = vmatpush1.bf16.msra.mxu1 %v1519_v8  ;;  %v1533_v54 = vld [vmem:[%s2052_s3] sm:$0xff]   ;;  %v1538_v60 = vld [vmem:[%s2052_s3 + $0xc8] sm:$0xff]   ;;  %v1541_v8 = vld [vmem:[%s2052_s3 + $0x10] sm:$0xff]   ;;  %s2000_s12 = scalar_lea.hbm %s2054_s5, %s1369_s6 }
  0x16   : > { %s1295_s7 = sshll.u32 %s2062_s30, 3  ;;  %472 = vmatprep.subr.bf16.mxu0 %v1520_v19  ;;  %555 = vmatprep.subr.bf16.mxu1 %v1522_v22  ;;  %v1535_v55 = vld [vmem:[%s2052_s3 + $0x80] sm:$0xff]   ;;  %v1537_v2 = vld [vmem:[%s2052_s3 + $0x8] sm:$0xff]   ;;  %v1545_v19 = vld [vmem:[%s2052_s3 + $0x18] sm:$0xff]   ;;  %s1588_s14 = sshll.u32 %s1650_s22, 4  ;;  %s1589_s14 = int_to_ptr.vmem [resolvable:$false] %s1588_s14 }
  0x17   : > { %s1768_s10 = scalar_lea.vmem %s2049_s0, %s1295_s7  ;;  %s1815_s25 = scalar_lea.vmem %s2050_s1, %s1295_s7  ;;  %v1539_v3 = vld [vmem:[%s2052_s3 + $0x88] sm:$0xff]   ;;  %v1550_v22 = vld [vmem:[%s2052_s3 + $0xe0] sm:$0xff]  }
  0x18   : > { %v253_v9 = vld [vmem:[%s1768_s10 + $0x10] sm:$0xff]  ;;  %v251_v10 = vld [vmem:[%s1768_s10] sm:$0xff]  ;;  %v254_v11 = vld [vmem:[%s1768_s10 + $0x18] sm:$0xff]  ;;  %s232_s7 = sand.u32 1, %s1638_s19   ;;  %s1590_s15 = scalar_lea.vmem %s1589_s14, 2560 }
  0x19   : > { %v263_v12 = vadd.s32 32, %v253_v9  ;;  %v261_v13 = vadd.s32 32, %v251_v10  ;;  %v252_v14 = vld [vmem:[%s1768_s10 + $0x8] sm:$0xff]  ;;  %v255_v16 = vld [vmem:[%s1768_s10 + $0x20] sm:$0xff]  ;;  %v264_v17 = vadd.s32 32, %v254_v11  ;;  %v258_v21 = vld [vmem:[%s1768_s10 + $0x38] sm:$0xff]  ;;  %473 = vmatpush1.bf16.msra.mxu0 %v1524_v23  ;;  %556 = vmatpush1.bf16.msra.mxu1 %v1525_v26 }
  0x1a   : > { %v256_v15 = vld [vmem:[%s1768_s10 + $0x28] sm:$0xff]  ;;  %v262_v18 = vadd.s32 32, %v252_v14  ;;  %v265_v24 = vadd.s32 32, %v255_v16  ;;  %v257_v25 = vld [vmem:[%s1768_s10 + $0x30] sm:$0xff]  ;;  %v268_v29 = vadd.s32 32, %v258_v21  ;;  %v259_v32 = vld [vmem:[%s1768_s10 + $0x40] sm:$0xff]  ;;  %474 = vmatprep.subr.bf16.mxu0 %v1526_v27  ;;  %557 = vmatprep.subr.bf16.mxu1 %v1528_v28 }
  0x1b   : > { %278 = vperm.xlu1 %1507, %v263_v12   ;;  %272 = vperm.xlu0 %1506, %v261_v13   ;;  %v266_v20 = vadd.s32 32, %v256_v15  ;;  %v267_v30 = vadd.s32 32, %v257_v25  ;;  %v260_v31 = vld [vmem:[%s1768_s10 + $0x48] sm:$0xff]  ;;  %v269_v36 = vadd.s32 32, %v259_v32  ;;  %v336_v43 = vld [vmem:[%s1815_s25] sm:$0xff]  ;;  %v338_v52 = vld [vmem:[%s1815_s25 + $0x10] sm:$0xff] }
  0x1c   : > { %v270_v35 = vadd.s32 32, %v260_v31  ;;  %v337_v44 = vld [vmem:[%s1815_s25 + $0x8] sm:$0xff]  ;;  %v339_v57 = vld [vmem:[%s1815_s25 + $0x18] sm:$0xff]  ;;  %v340_v7 = vld [vmem:[%s1815_s25 + $0x20] sm:$0xff]  ;;  %s2008_s13 = scalar_lea.sflag [#allocation3], %s232_s7 }
  0x1d   : > { %475 = vmatpush1.bf16.msra.mxu0 %v1530_v33  ;;  %558 = vmatpush1.bf16.msra.mxu1 %v1531_v34  ;;  %v346_v46 = vpack.c.bf16 %v337_v44, %v336_v43  ;;  %v347_v63 = vpack.c.bf16 %v339_v57, %v338_v52  ;;  %v1543_v9 = vld [vmem:[%s2052_s3 + $0x90] sm:$0xff]   ;;  %v341_v11 = vld [vmem:[%s1815_s25 + $0x28] sm:$0xff]  ;;  %v1544_v13 = vld [vmem:[%s2052_s3 + $0x58] sm:$0xff]  }
  0x1e   : > { %1370 = vmatprep.subr.bf16.mxu0 %v1532_v37  ;;  %1416 = vmatprep.subr.bf16.mxu1 %v1534_v38  ;;  %v1546_v14 = vld [vmem:[%s2052_s3 + $0xd8] sm:$0xff]   ;;  %v1548_v21 = vld [vmem:[%s2052_s3 + $0x60] sm:$0xff]   ;;  %v1554_v31 = vld [vmem:[%s2052_s3 + $0xe8] sm:$0xff]  }
  0x1f   : > { %281 = vperm.xlu1 %1507, %v264_v17   ;;  %275 = vperm.xlu0 %1506, %v262_v18   ;;  %v348_v17 = vpack.c.bf16 %v341_v11, %v340_v7  ;;  %v1549_v25 = vld [vmem:[%s2052_s3 + $0x20] sm:$0xff]   ;;  %v343_v28 = vld [vmem:[%s1815_s25 + $0x38] sm:$0xff]  ;;  %v1555_v37 = vld [vmem:[%s2052_s3 + $0xa8] sm:$0xff]  }
  0x20   : > { %v1551_v26 = vld [vmem:[%s2052_s3 + $0xa0] sm:$0xff]   ;;  %v1556_v38 = vld [vmem:[%s2052_s3 + $0x70] sm:$0xff]   ;;  %v345_v43 = vld [vmem:[%s1815_s25 + $0x48] sm:$0xff] }
  0x21   : > { %v1563_v52 = vld [vmem:[%s2052_s3 + $0xb8] sm:$0xff]  }
  0x23   : > { %287 = vperm.xlu1 %1507, %v266_v20   ;;  %284 = vperm.xlu0 %1506, %v265_v24   ;;  %v1547_v20 = vld [vmem:[%s2052_s3 + $0x98] sm:$0xff]   ;;  %v342_v24 = vld [vmem:[%s1815_s25 + $0x30] sm:$0xff] }
  0x24   : > { %v349_v34 = vpack.c.bf16 %v343_v28, %v342_v24 }
  0x27   : > { %293 = vperm.xlu1 %1507, %v268_v29   ;;  %290 = vperm.xlu0 %1506, %v267_v30   ;;  %v1552_v30 = vld [vmem:[%s2052_s3 + $0x68] sm:$0xff]  }
  0x2b   : > { %299 = vperm.xlu1 %1507, %v270_v35   ;;  %296 = vperm.xlu0 %1506, %v269_v36   ;;  %v1553_v36 = vld [vmem:[%s2052_s3 + $0x28] sm:$0xff]  }
  0x9a   : > { %v279_v41 = vpop.permute.xlu1 %278  ;;  %v273_v42 = vpop.permute.xlu0 %272 }
  0x9b   : > { %vm301_vm0 = vcmp.eq.s32.totalorder %v1817_v40, %v273_v42  ;;  %vm303_vm2 = vcmp.eq.s32.totalorder %v1817_v40, %v279_v41  ;;  %v344_v42 = vld [vmem:[%s1815_s25 + $0x40] sm:$0xff]  ;;  %s1462_s25 = smul.u32 80, %s232_s7 }
  0x9c   : > { %v1297_v48 = vsel %vm301_vm0, 1.0, %v1649_v47  ;;  %v1299_v56 = vsel %vm303_vm2, 1.0, %v1649_v47 }
  0x9d   : > { %s1979_s26 = scalar_lea.vmem [#allocation2], %s1462_s25 }
  0x9e   : > { %v276_v45 = vpop.permute.xlu0 %275  ;;  %v282_v49 = vpop.permute.xlu1 %281  ;;  %s1217_s8 = sshll.u32 %s1979_s26, 4  ;;  %s2002_s8 = int_to_ptr.vmem [resolvable:$true] %s1217_s8 }
  0x9f   : > { %vm302_vm1 = vcmp.eq.s32.totalorder %v1817_v40, %v276_v45  ;;  %vm304_vm3 = vcmp.eq.s32.totalorder %v1817_v40, %v282_v49  ;;  %v350_v45 = vpack.c.bf16 %v345_v43, %v344_v42  ;;  %v1560_v49 = vld [vmem:[%s2052_s3 + $0x78] sm:$0xff]   ;;  %s1584_s10 = scalar_lea.vmem %s2002_s8, 1280  ;;  %p1591_p0 = scmp.lt.s32.totalorder %s2002_s8, %s1589_s14 }
  0xa0   : > { %v1298_v50 = vsel %vm302_vm1, 1.0, %v1649_v47  ;;  %v1300_v58 = vsel %vm304_vm3, 1.0, %v1649_v47  ;;  %p1585_p11 = scmp.ne.s32.totalorder %s2002_s8, %s1584_s10  ;;  %p1592_p1 = scmp.lt.s32.totalorder %s1590_s15, %s1584_s10 }
  0xa1   : > { %v331_v51 = vpack.c.bf16 %v1298_v50, %v1297_v48  ;;  %v332_v0 = vpack.c.bf16 %v1300_v58, %v1299_v56  ;;  %v1558_v48 = vld [vmem:[%s2052_s3 + $0xf0] sm:$0xff]   ;;  %v1562_v50 = vld [vmem:[%s2052_s3 + $0xf8] sm:$0xff]  }
  0xa2   : > { %v288_v61 = vpop.permute.xlu1 %287  ;;  %v285_v62 = vpop.permute.xlu0 %284  ;;  %p1586_p12 = pnand %p1585_p11, %p1721_p5  ;;  %p1593_p2 = por %p1592_p1, %p1591_p0 }
  0xa3   : > { %v351_v53 = vadd.bf16 %v346_v46, %v331_v51  ;;  %vm306_vm5 = vcmp.eq.s32.totalorder %v1817_v40, %v288_v61  ;;  %vm305_vm6 = vcmp.eq.s32.totalorder %v1817_v40, %v285_v62  ;;  %v352_v6 = vadd.bf16 %v347_v63, %v332_v0  ;;  %v1561_v51 = vld [vmem:[%s2052_s3 + $0x38] sm:$0xff]  }
  0xa4   : > { %v1302_v10 = vsel %vm306_vm5, 1.0, %v1649_v47  ;;  %v1301_v12 = vsel %vm305_vm6, 1.0, %v1649_v47  ;;  %p1587_p13 = pneg %p1586_p12 }
  0xa5   : > { %1323 = vmatmul.mubr.msk.bf16.vlgmr.msra.gmra.mrb[0].mxu0 %vm452_vm4, %v351_v53  ;;  %1328 = vmatmul.mubr.msk.bf16.vlgmr.msra.gmra.mrb[0].mxu1 %vm452_vm4, %v351_v53  ;;  %v333_v18 = vpack.c.bf16 %v1302_v10, %v1301_v12 }
  0xa6   : > { %510 = vmatprep.mubr.bf16.mxu0 %v1648_v1  ;;  %593 = vmatprep.mubr.bf16.mxu1 %v1648_v1  ;;  %v294_v15 = vpop.permute.xlu1 %293  ;;  %v291_v16 = vpop.permute.xlu0 %290  ;;  %p1594_p3 = pnand %p1593_p2, %p1587_p13 }
  0xa7   : > { %1371 = vmatpush3.bf16.msra.mxu0 %v1533_v54  ;;  %1417 = vmatpush3.bf16.msra.mxu1 %v1535_v55  ;;  %vm308_vm7 = vcmp.eq.s32.totalorder %v1817_v40, %v294_v15  ;;  %vm307_vm8 = vcmp.eq.s32.totalorder %v1817_v40, %v291_v16  ;;  %v353_v23 = vadd.bf16 %v348_v17, %v333_v18 }
  0xa8   : > { %1372 = vmatprep.subr.bf16.mxu0 %v1536_v59  ;;  %1418 = vmatprep.subr.bf16.mxu1 %v1538_v60  ;;  %v1304_v27 = vsel %vm308_vm7, 1.0, %v1649_v47  ;;  %v1303_v29 = vsel %vm307_vm8, 1.0, %v1649_v47 }
  0xa9   : > { %v334_v35 = vpack.c.bf16 %v1304_v27, %v1303_v29 }
  0xaa   : > { %v300_v32 = vpop.permute.xlu1 %299  ;;  %v297_v33 = vpop.permute.xlu0 %296 }
  0xab   : > { %1373 = vmatpush3.bf16.msra.mxu0 %v1537_v2  ;;  %1419 = vmatpush3.bf16.msra.mxu1 %v1539_v3  ;;  %vm310_vm9 = vcmp.eq.s32.totalorder %v1817_v40, %v300_v32  ;;  %vm309_vm10 = vcmp.eq.s32.totalorder %v1817_v40, %v297_v33  ;;  %v354_v39 = vadd.bf16 %v349_v34, %v334_v35 }
  0xac   : > { %1374 = vmatprep.subr.bf16.mxu0 %v1540_v4  ;;  %1420 = vmatprep.subr.bf16.mxu1 %v1542_v5  ;;  %v1306_v41 = vsel %vm310_vm9, 1.0, %v1649_v47  ;;  %v1305_v44 = vsel %vm309_vm10, 1.0, %v1649_v47  ;;  %v1557_v47 = vld [vmem:[%s2052_s3 + $0x30] sm:$0xff]  }
  0xad   : > { %1324 = vmatmul.mubr.msk.bf16.gmra.mrb[4].mxu0 %vm452_vm4, %v352_v6  ;;  %1329 = vmatmul.mubr.msk.bf16.gmra.mrb[4].mxu1 %vm452_vm4, %v352_v6  ;;  %v335_v40 = vpack.c.bf16 %v1306_v41, %v1305_v44 }
  0xae   : > { %520 = vmatprep.mubr.bf16.mxu0 %v1648_v1  ;;  %603 = vmatprep.mubr.bf16.mxu1 %v1648_v1 }
  0xaf   : > { %1375 = vmatpush3.bf16.msra.mxu0 %v1541_v8  ;;  %1421 = vmatpush3.bf16.msra.mxu1 %v1543_v9  ;;  %v355_v46 = vadd.bf16 %v350_v45, %v335_v40 }
  0xb0   : > { %1376 = vmatprep.subr.bf16.mxu0 %v1544_v13  ;;  %1422 = vmatprep.subr.bf16.mxu1 %v1546_v14 }
  0xb3   : > { %1377 = vmatpush3.bf16.msra.mxu0 %v1545_v19  ;;  %1423 = vmatpush3.bf16.msra.mxu1 %v1547_v20 }
  0xb4   : > { %1378 = vmatprep.subr.bf16.mxu0 %v1548_v21  ;;  %1424 = vmatprep.subr.bf16.mxu1 %v1550_v22 }
  0xb5   : > { %1325 = vmatmul.mubr.msk.bf16.gmra.mrb[8].mxu0 %vm452_vm4, %v353_v23  ;;  %1330 = vmatmul.mubr.msk.bf16.gmra.mrb[8].mxu1 %vm452_vm4, %v353_v23 }
  0xb6   : > { %530 = vmatprep.mubr.bf16.mxu0 %v1648_v1  ;;  %613 = vmatprep.mubr.bf16.mxu1 %v1648_v1 }
  0xb7   : > { %1379 = vmatpush3.bf16.msra.mxu0 %v1549_v25  ;;  %1425 = vmatpush3.bf16.msra.mxu1 %v1551_v26 }
  0xb8   : > { %1380 = vmatprep.subr.bf16.mxu0 %v1552_v30  ;;  %1426 = vmatprep.subr.bf16.mxu1 %v1554_v31 }
  0xbb   : > { %1381 = vmatpush3.bf16.msra.mxu0 %v1553_v36  ;;  %1427 = vmatpush3.bf16.msra.mxu1 %v1555_v37 }
  0xbc   : > { %1382 = vmatprep.subr.bf16.mxu0 %v1556_v38  ;;  %1428 = vmatprep.subr.bf16.mxu1 %v1558_v48 }
  0xbd   : > { %1326 = vmatmul.mubr.msk.bf16.gmra.mrb[12].mxu0 %vm452_vm4, %v354_v39  ;;  %1331 = vmatmul.mubr.msk.bf16.gmra.mrb[12].mxu1 %vm452_vm4, %v354_v39 }
  0xbe   : > { %540 = vmatprep.mubr.bf16.mxu0 %v1648_v1  ;;  %623 = vmatprep.mubr.bf16.mxu1 %v1648_v1  ;;  %v1559_v1 = vld [vmem:[%s2052_s3 + $0xb0] sm:$0xff]  }
  0xbf   : > { %1383 = vmatpush3.bf16.msra.mxu0 %v1557_v47  ;;  %1429 = vmatpush3.bf16.msra.mxu1 %v1559_v1 }
  0xc0   : > { %1384 = vmatprep.subr.bf16.mxu0 %v1560_v49  ;;  %1430 = vmatprep.subr.bf16.mxu1 %v1562_v50 }
  0xc3   : > { %1385 = vmatpush3.bf16.msra.mxu0 %v1561_v51  ;;  %1431 = vmatpush3.bf16.msra.mxu1 %v1563_v52 }
  0xc5   : > { %1327 = vmatmul.mubr.msk.bf16.gmra.mrb[16].mxu0 %vm452_vm4, %v355_v46  ;;  %1332 = vmatmul.mubr.msk.bf16.gmra.mrb[16].mxu1 %vm452_vm4, %v355_v46 }
 0x178   : > { %v502_v53 = vpop.f32.mrb[0].mxu0  ;;  %v585_v54 = vpop.f32.mrb[0].mxu1 }
 0x179   : > { %vm634_vm11 = vcmp.gt.f32.partialorder %v502_v53, 0.0  ;;  %v674_v55 = vmul.f32 0.2, %v502_v53  ;;  %v676_v56 = vmul.f32 0.2, %v585_v54  ;;  %vm636_vm12 = vcmp.gt.f32.partialorder %v585_v54, 0.0 }
 0x17a   : > { %v504_v57 = vpop.f32.mrb[1].mxu0  ;;  %v587_v58 = vpop.f32.mrb[1].mxu1 }
 0x17b   : > { %v714_v59 = vsel %vm634_vm11, %v502_v53, %v674_v55  ;;  %v506_v60 = vpop.f32.mrb[2].mxu0  ;;  %v589_v61 = vpop.f32.mrb[2].mxu1  ;;  %vm635_vm13 = vcmp.gt.f32.partialorder %v504_v57, 0.0  ;;  %v675_v62 = vmul.f32 0.2, %v504_v57  ;;  %v716_v0 = vsel %vm636_vm12, %v585_v54, %v676_v56 }
 0x17c   : > { %vm638_vm14 = vcmp.gt.f32.partialorder %v506_v60, 0.0  ;;  %v678_v63 = vmul.f32 0.2, %v506_v60  ;;  %vm637_vm15 = vcmp.gt.f32.partialorder %v587_v58, 0.0  ;;  %vm640_vm0 = vcmp.gt.f32.partialorder %v589_v61, 0.0  ;;  %v508_v3 = vpop.f32.mrb[3].mxu0 }
 0x17d   : > { %v680_v2 = vmul.f32 0.2, %v589_v61  ;;  %v591_v4 = vpop.f32.mrb[3].mxu1  ;;  %v677_v5 = vmul.f32 0.2, %v587_v58  ;;  %vm639_vm1 = vcmp.gt.f32.partialorder %v508_v3, 0.0  ;;  %v715_v19 = vsel %vm635_vm13, %v504_v57, %v675_v62 }
 0x17e   : > { %v718_v6 = vsel %vm638_vm14, %v506_v60, %v678_v63  ;;  %v679_v7 = vmul.f32 0.2, %v508_v3  ;;  %vm641_vm2 = vcmp.gt.f32.partialorder %v591_v4, 0.0  ;;  %v681_v10 = vmul.f32 0.2, %v591_v4 }
 0x17f   : > { %v754_v8 = vpack.c.bf16 %v718_v6, %v714_v59  ;;  %v720_v9 = vsel %vm640_vm0, %v589_v61, %v680_v2  ;;  %v717_v20 = vsel %vm637_vm15, %v587_v58, %v677_v5 }
 0x180   : > { %v756_v11 = vpack.c.bf16 %v720_v9, %v716_v0  ;;  %v719_v12 = vsel %vm639_vm1, %v508_v3, %v679_v7  ;;  %v512_v13 = vpop.f32.mrb[4].mxu0  ;;  %v595_v14 = vpop.f32.mrb[4].mxu1  ;;  %v721_v15 = vsel %vm641_vm2, %v591_v4, %v681_v10 }
 0x181   : > { %vm642_vm3 = vcmp.gt.f32.partialorder %v512_v13, 0.0  ;;  %v682_v16 = vmul.f32 0.2, %v512_v13  ;;  %v514_v17 = vpop.f32.mrb[5].mxu0  ;;  %v597_v18 = vpop.f32.mrb[5].mxu1  ;;  %vm644_vm4 = vcmp.gt.f32.partialorder %v595_v14, 0.0  ;;  %v755_v23 = vpack.c.bf16 %v719_v12, %v715_v19 }
 0x182   : > { %v684_v21 = vmul.f32 0.2, %v595_v14  ;;  %vm643_vm5 = vcmp.gt.f32.partialorder %v514_v17, 0.0  ;;  %v683_v22 = vmul.f32 0.2, %v514_v17  ;;  %v757_v24 = vpack.c.bf16 %v721_v15, %v717_v20  ;;  %v516_v25 = vpop.f32.mrb[6].mxu0 }
 0x183   : > { %v599_v26 = vpop.f32.mrb[6].mxu1  ;;  %v722_v27 = vsel %vm642_vm3, %v512_v13, %v682_v16  ;;  %vm645_vm6 = vcmp.gt.f32.partialorder %v597_v18, 0.0  ;;  %vm646_vm7 = vcmp.gt.f32.partialorder %v516_v25, 0.0  ;;  %v686_v28 = vmul.f32 0.2, %v516_v25  ;;  %v518_v29 = vpop.f32.mrb[7].mxu0  ;;  %1069 = vmatprep.mubr.bf16.mxu0 %v755_v23 }
 0x184   : > { %v601_v30 = vpop.f32.mrb[7].mxu1  ;;  %v685_v31 = vmul.f32 0.2, %v597_v18  ;;  %1142 = vmatprep.mubr.bf16.mxu1 %v757_v24  ;;  %vm648_vm8 = vcmp.gt.f32.partialorder %v599_v26, 0.0  ;;  %v688_v32 = vmul.f32 0.2, %v599_v26  ;;  %1070 = vmatmul.mubr.bf16.vlgmr.msra.gmra.mrb[20].mxu0 %v754_v8  ;;  %v724_v36 = vsel %vm644_vm4, %v595_v14, %v684_v21 }
 0x185   : > { %vm647_vm9 = vcmp.gt.f32.partialorder %v518_v29, 0.0  ;;  %v726_v33 = vsel %vm646_vm7, %v516_v25, %v686_v28  ;;  %1143 = vmatmul.mubr.bf16.vlgmr.msra.gmra.mrb[20].mxu1 %v756_v11  ;;  %v687_v34 = vmul.f32 0.2, %v518_v29  ;;  %vm649_vm10 = vcmp.gt.f32.partialorder %v601_v30, 0.0 }
 0x186   : > { %v689_v35 = vmul.f32 0.2, %v601_v30  ;;  %v728_v37 = vsel %vm648_vm8, %v599_v26, %v688_v32  ;;  %v758_v38 = vpack.c.bf16 %v726_v33, %v722_v27  ;;  %v723_v39 = vsel %vm643_vm5, %v514_v17, %v683_v22 }
 0x187   : > { %v727_v41 = vsel %vm647_vm9, %v518_v29, %v687_v34  ;;  %v760_v45 = vpack.c.bf16 %v728_v37, %v724_v36  ;;  %v725_v40 = vsel %vm645_vm6, %v597_v18, %v685_v31 }
 0x188   : > { %v729_v42 = vsel %vm649_vm10, %v601_v30, %v689_v35  ;;  %v522_v43 = vpop.f32.mrb[8].mxu0  ;;  %v605_v44 = vpop.f32.mrb[8].mxu1  ;;  %v759_v49 = vpack.c.bf16 %v727_v41, %v723_v39 }
 0x189   : > { %vm650_vm11 = vcmp.gt.f32.partialorder %v522_v43, 0.0  ;;  %v690_v46 = vmul.f32 0.2, %v522_v43  ;;  %v692_v47 = vmul.f32 0.2, %v605_v44  ;;  %vm652_vm12 = vcmp.gt.f32.partialorder %v605_v44, 0.0 }
 0x18a   : > { %v524_v48 = vpop.f32.mrb[9].mxu0  ;;  %v607_v1 = vpop.f32.mrb[9].mxu1  ;;  %v761_v50 = vpack.c.bf16 %v729_v42, %v725_v40  ;;  %1077 = vmatprep.mubr.bf16.mxu0 %v759_v49 }
 0x18b   : > { %v730_v51 = vsel %vm650_vm11, %v522_v43, %v690_v46  ;;  %v526_v52 = vpop.f32.mrb[10].mxu0  ;;  %v609_v53 = vpop.f32.mrb[10].mxu1  ;;  %vm651_vm13 = vcmp.gt.f32.partialorder %v524_v48, 0.0  ;;  %v691_v54 = vmul.f32 0.2, %v524_v48  ;;  %v732_v56 = vsel %vm652_vm12, %v605_v44, %v692_v47 }
 0x18c   : > { %1150 = vmatprep.mubr.bf16.mxu1 %v761_v50  ;;  %vm654_vm14 = vcmp.gt.f32.partialorder %v526_v52, 0.0  ;;  %v694_v55 = vmul.f32 0.2, %v526_v52  ;;  %vm653_vm15 = vcmp.gt.f32.partialorder %v607_v1, 0.0  ;;  %vm656_vm0 = vcmp.gt.f32.partialorder %v609_v53, 0.0  ;;  %v528_v58 = vpop.f32.mrb[11].mxu0  ;;  %1078 = vmatmul.mubr.bf16.gmra.mrb[24].mxu0 %v758_v38 }
 0x18d   : > { %v696_v57 = vmul.f32 0.2, %v609_v53  ;;  %v611_v59 = vpop.f32.mrb[11].mxu1  ;;  %v693_v60 = vmul.f32 0.2, %v607_v1  ;;  %1151 = vmatmul.mubr.bf16.gmra.mrb[24].mxu1 %v760_v45  ;;  %vm655_vm1 = vcmp.gt.f32.partialorder %v528_v58, 0.0  ;;  %v731_v11 = vsel %vm651_vm13, %v524_v48, %v691_v54 }
 0x18e   : > { %v734_v61 = vsel %vm654_vm14, %v526_v52, %v694_v55  ;;  %v695_v62 = vmul.f32 0.2, %v528_v58  ;;  %vm657_vm2 = vcmp.gt.f32.partialorder %v611_v59, 0.0  ;;  %v697_v0 = vmul.f32 0.2, %v611_v59 }
 0x18f   : > { %v736_v63 = vsel %vm656_vm0, %v609_v53, %v696_v57  ;;  %v762_v2 = vpack.c.bf16 %v734_v61, %v730_v51  ;;  %v733_v12 = vsel %vm653_vm15, %v607_v1, %v693_v60 }
 0x190   : > { %v735_v3 = vsel %vm655_vm1, %v528_v58, %v695_v62  ;;  %v532_v4 = vpop.f32.mrb[12].mxu0  ;;  %v615_v5 = vpop.f32.mrb[12].mxu1  ;;  %v764_v6 = vpack.c.bf16 %v736_v63, %v732_v56  ;;  %v737_v7 = vsel %vm657_vm2, %v611_v59, %v697_v0 }
 0x191   : > { %vm658_vm3 = vcmp.gt.f32.partialorder %v532_v4, 0.0  ;;  %v698_v8 = vmul.f32 0.2, %v532_v4  ;;  %v534_v9 = vpop.f32.mrb[13].mxu0  ;;  %v617_v10 = vpop.f32.mrb[13].mxu1  ;;  %vm660_vm4 = vcmp.gt.f32.partialorder %v615_v5, 0.0  ;;  %v763_v15 = vpack.c.bf16 %v735_v3, %v731_v11 }
 0x192   : > { %v700_v13 = vmul.f32 0.2, %v615_v5  ;;  %vm659_vm5 = vcmp.gt.f32.partialorder %v534_v9, 0.0  ;;  %v699_v14 = vmul.f32 0.2, %v534_v9  ;;  %v765_v16 = vpack.c.bf16 %v737_v7, %v733_v12  ;;  %v536_v17 = vpop.f32.mrb[14].mxu0 }
 0x193   : > { %v619_v18 = vpop.f32.mrb[14].mxu1  ;;  %v738_v19 = vsel %vm658_vm3, %v532_v4, %v698_v8  ;;  %vm661_vm6 = vcmp.gt.f32.partialorder %v617_v10, 0.0  ;;  %vm662_vm7 = vcmp.gt.f32.partialorder %v536_v17, 0.0  ;;  %v702_v20 = vmul.f32 0.2, %v536_v17  ;;  %v538_v21 = vpop.f32.mrb[15].mxu0  ;;  %1085 = vmatprep.mubr.bf16.mxu0 %v763_v15 }
 0x194   : > { %v621_v22 = vpop.f32.mrb[15].mxu1  ;;  %v701_v23 = vmul.f32 0.2, %v617_v10  ;;  %1158 = vmatprep.mubr.bf16.mxu1 %v765_v16  ;;  %vm664_vm8 = vcmp.gt.f32.partialorder %v619_v18, 0.0  ;;  %v704_v24 = vmul.f32 0.2, %v619_v18  ;;  %1086 = vmatmul.mubr.bf16.gmra.mrb[28].mxu0 %v762_v2  ;;  %v740_v28 = vsel %vm660_vm4, %v615_v5, %v700_v13 }
 0x195   : > { %vm663_vm9 = vcmp.gt.f32.partialorder %v538_v21, 0.0  ;;  %v742_v25 = vsel %vm662_vm7, %v536_v17, %v702_v20  ;;  %1159 = vmatmul.mubr.bf16.gmra.mrb[28].mxu1 %v764_v6  ;;  %v703_v26 = vmul.f32 0.2, %v538_v21  ;;  %vm665_vm10 = vcmp.gt.f32.partialorder %v621_v22, 0.0  ;;  %v1970_v4 = vld [vmem:[%s2053_s4] ss:$0 sm:$0xff] }
 0x196   : > { %v705_v27 = vmul.f32 0.2, %v621_v22  ;;  %v744_v29 = vsel %vm664_vm8, %v619_v18, %v704_v24  ;;  %v766_v30 = vpack.c.bf16 %v742_v25, %v738_v19  ;;  %v739_v31 = vsel %vm659_vm5, %v534_v9, %v699_v14 }
 0x197   : > { %v743_v32 = vsel %vm663_vm9, %v538_v21, %v703_v26  ;;  %v768_v36 = vpack.c.bf16 %v744_v29, %v740_v28  ;;  %v741_v37 = vsel %vm661_vm6, %v617_v10, %v701_v23 }
 0x198   : > { %v745_v33 = vsel %vm665_vm10, %v621_v22, %v705_v27  ;;  %v542_v34 = vpop.f32.mrb[16].mxu0  ;;  %v625_v35 = vpop.f32.mrb[16].mxu1  ;;  %v767_v43 = vpack.c.bf16 %v743_v32, %v739_v31 }
 0x199   : > { %vm666_vm11 = vcmp.gt.f32.partialorder %v542_v34, 0.0  ;;  %v706_v38 = vmul.f32 0.2, %v542_v34  ;;  %v708_v39 = vmul.f32 0.2, %v625_v35  ;;  %vm668_vm12 = vcmp.gt.f32.partialorder %v625_v35, 0.0 }
 0x19a   : > { %v544_v41 = vpop.f32.mrb[17].mxu0  ;;  %v627_v42 = vpop.f32.mrb[17].mxu1  ;;  %v769_v44 = vpack.c.bf16 %v745_v33, %v741_v37  ;;  %1093 = vmatprep.mubr.bf16.mxu0 %v767_v43 }
 0x19b   : > { %v707_v45 = vmul.f32 0.2, %v544_v41  ;;  %v546_v40 = vpop.f32.mrb[18].mxu0  ;;  %v629_v46 = vpop.f32.mrb[18].mxu1  ;;  %v746_v47 = vsel %vm666_vm11, %v542_v34, %v706_v38  ;;  %v709_v48 = vmul.f32 0.2, %v627_v42  ;;  %v748_v49 = vsel %vm668_vm12, %v625_v35, %v708_v39 }
 0x19c   : > { %1166 = vmatprep.mubr.bf16.mxu1 %v769_v44  ;;  %vm670_vm13 = vcmp.gt.f32.partialorder %v546_v40, 0.0  ;;  %v710_v1 = vmul.f32 0.2, %v546_v40  ;;  %vm667_vm14 = vcmp.gt.f32.partialorder %v544_v41, 0.0  ;;  %vm672_vm15 = vcmp.gt.f32.partialorder %v629_v46, 0.0  ;;  %v548_v51 = vpop.f32.mrb[19].mxu0  ;;  %1094 = vmatmul.mubr.bf16.gmra.mrb[32].mxu0 %v766_v30 }
 0x19d   : > { %v712_v50 = vmul.f32 0.2, %v629_v46  ;;  %v631_v52 = vpop.f32.mrb[19].mxu1  ;;  %vm669_vm0 = vcmp.gt.f32.partialorder %v627_v42, 0.0  ;;  %1167 = vmatmul.mubr.bf16.gmra.mrb[32].mxu1 %v768_v36  ;;  %vm671_vm1 = vcmp.gt.f32.partialorder %v548_v51, 0.0  ;;  %v747_v58 = vsel %vm667_vm14, %v544_v41, %v707_v45 }
 0x19e   : > { %v750_v53 = vsel %vm670_vm13, %v546_v40, %v710_v1  ;;  %v711_v54 = vmul.f32 0.2, %v548_v51  ;;  %vm673_vm2 = vcmp.gt.f32.partialorder %v631_v52, 0.0  ;;  %v713_v56 = vmul.f32 0.2, %v631_v52 }
 0x19f   : > { %v752_v55 = vsel %vm672_vm15, %v629_v46, %v712_v50  ;;  %v770_v57 = vpack.c.bf16 %v750_v53, %v746_v47  ;;  %v749_v61 = vsel %vm669_vm0, %v627_v42, %v709_v48 }
 0x1a0   : > { %v751_v59 = vsel %vm671_vm1, %v548_v51, %v711_v54  ;;  %v772_v60 = vpack.c.bf16 %v752_v55, %v748_v49  ;;  %v753_v62 = vsel %vm673_vm2, %v631_v52, %v713_v56 }
 0x1a1   : > { %v771_v63 = vpack.c.bf16 %v751_v59, %v747_v58  ;;  %v773_v0 = vpack.c.bf16 %v753_v62, %v749_v61 }
 0x1a3   : > { %1101 = vmatprep.mubr.bf16.mxu0 %v771_v63  ;;  %1174 = vmatprep.mubr.bf16.mxu1 %v773_v0 }
 0x1a4   : > { %1102 = vmatmul.mubr.bf16.gmra.mrb[36].mxu0 %v770_v57 }
 0x1a5   : > { %1175 = vmatmul.mubr.bf16.gmra.mrb[36].mxu1 %v772_v60 }
 0x257   : > { %v1386_v2 = vpop.f32.mrb[20].mxu0 }
 0x258   : > { %v1432_v3 = vpop.f32.mrb[20].mxu1  ;;  %v1387_v5 = vpop.f32.mrb[21].mxu0 }
 0x259   : > { %v1433_v6 = vpop.f32.mrb[21].mxu1  ;;  %v1388_v7 = vadd.f32 %v1387_v5, %v1386_v2  ;;  %v1389_v9 = vpop.f32.mrb[22].mxu0 }
 0x25a   : > { %v1434_v8 = vadd.f32 %v1433_v6, %v1432_v3  ;;  %v1435_v10 = vpop.f32.mrb[22].mxu1  ;;  %v1390_v11 = vpop.f32.mrb[23].mxu0 }
 0x25b   : > { %v1436_v12 = vpop.f32.mrb[23].mxu1  ;;  %v1072_v13 = vadd.f32 %v1388_v7, %v1970_v4  ;;  %v1391_v14 = vadd.f32 %v1390_v11, %v1389_v9 }
 0x25c   : > { %v1437_v15 = vadd.f32 %v1436_v12, %v1435_v10 }
 0x25d   : > { %v1145_v16 = vadd.f32 %v1434_v8, %v1072_v13  ;;  %v1075_v17 = vadd.f32 %v1391_v14, %v1970_v4 }
 0x25f   : > { %1564 = vtanh.f32 %v1145_v16  ;;  %v1148_v18 = vadd.f32 %v1437_v15, %v1075_v17  ;;  %v1392_v19 = vpop.f32.mrb[24].mxu0 }
 0x260   : > { %v1438_v20 = vpop.f32.mrb[24].mxu1  ;;  %v1393_v21 = vpop.f32.mrb[25].mxu0 }
 0x261   : > { %v1439_v22 = vpop.f32.mrb[25].mxu1  ;;  %1566 = vtanh.f32 %v1148_v18  ;;  %v1394_v23 = vadd.f32 %v1393_v21, %v1392_v19  ;;  %v1395_v25 = vpop.f32.mrb[26].mxu0 }
 0x262   : > { %v1440_v24 = vadd.f32 %v1439_v22, %v1438_v20  ;;  %v1441_v26 = vpop.f32.mrb[26].mxu1  ;;  %v1396_v27 = vpop.f32.mrb[27].mxu0 }
 0x263   : > { %v1442_v28 = vpop.f32.mrb[27].mxu1  ;;  %v1080_v29 = vadd.f32 %v1394_v23, %v1970_v4  ;;  %v1397_v30 = vadd.f32 %v1396_v27, %v1395_v25 }
 0x264   : > { %v1443_v31 = vadd.f32 %v1442_v28, %v1441_v26 }
 0x265   : > { %v1153_v32 = vadd.f32 %v1440_v24, %v1080_v29  ;;  %v1083_v33 = vadd.f32 %v1397_v30, %v1970_v4 }
 0x267   : > { %1568 = vtanh.f32 %v1153_v32  ;;  %v1156_v34 = vadd.f32 %v1443_v31, %v1083_v33  ;;  %v1398_v35 = vpop.f32.mrb[28].mxu0 }
 0x268   : > { %v1444_v36 = vpop.f32.mrb[28].mxu1  ;;  %v1399_v37 = vpop.f32.mrb[29].mxu0 }
 0x269   : > { %v1445_v38 = vpop.f32.mrb[29].mxu1  ;;  %v1565_v39 = vpop.eup %1564  ;;  %1570 = vtanh.f32 %v1156_v34  ;;  %v1400_v41 = vadd.f32 %v1399_v37, %v1398_v35 }
 0x26a   : > { %v1446_v42 = vadd.f32 %v1445_v38, %v1444_v36  ;;  %v1401_v43 = vpop.f32.mrb[30].mxu0  ;;  %v1447_v44 = vpop.f32.mrb[30].mxu1  ;;  %1193 = vst [vmem:[%s1979_s26] sm:$0xff] %v1565_v39 }
 0x26b   : > { %v1402_v45 = vpop.f32.mrb[31].mxu0  ;;  %v1448_v40 = vpop.f32.mrb[31].mxu1  ;;  %v1088_v47 = vadd.f32 %v1400_v41, %v1970_v4 }
 0x26c   : > { %v1567_v46 = vpop.eup %1566  ;;  %v1403_v48 = vadd.f32 %v1402_v45, %v1401_v43  ;;  %v1449_v1 = vadd.f32 %v1448_v40, %v1447_v44 }
 0x26d   : > { %1194 = vst [vmem:[%s1979_s26 + $0x8] sm:$0xff] %v1567_v46  ;;  %v1161_v49 = vadd.f32 %v1446_v42, %v1088_v47 }
 0x26e   : > { %v1091_v50 = vadd.f32 %v1403_v48, %v1970_v4 }
 0x26f   : > { %1572 = vtanh.f32 %v1161_v49  ;;  %v1404_v52 = vpop.f32.mrb[32].mxu0 }
 0x270   : > { %v1164_v51 = vadd.f32 %v1449_v1, %v1091_v50  ;;  %v1450_v53 = vpop.f32.mrb[32].mxu1  ;;  %v1405_v54 = vpop.f32.mrb[33].mxu0 }
 0x271   : > { %v1451_v55 = vpop.f32.mrb[33].mxu1  ;;  %v1569_v56 = vpop.eup %1568  ;;  %v1406_v57 = vadd.f32 %v1405_v54, %v1404_v52 }
 0x272   : > { %1574 = vtanh.f32 %v1164_v51  ;;  %v1452_v58 = vadd.f32 %v1451_v55, %v1450_v53  ;;  %v1407_v59 = vpop.f32.mrb[34].mxu0  ;;  %v1453_v60 = vpop.f32.mrb[34].mxu1  ;;  %1195 = vst [vmem:[%s1979_s26 + $0x10] sm:$0xff] %v1569_v56 }
 0x273   : > { %v1408_v61 = vpop.f32.mrb[35].mxu0  ;;  %v1454_v62 = vpop.f32.mrb[35].mxu1  ;;  %v1096_v0 = vadd.f32 %v1406_v57, %v1970_v4 }
 0x274   : > { %v1571_v63 = vpop.eup %1570  ;;  %v1409_v2 = vadd.f32 %v1408_v61, %v1407_v59  ;;  %v1455_v3 = vadd.f32 %v1454_v62, %v1453_v60 }
 0x275   : > { %1196 = vst [vmem:[%s1979_s26 + $0x18] sm:$0xff] %v1571_v63  ;;  %v1169_v5 = vadd.f32 %v1452_v58, %v1096_v0 }
 0x276   : > { %v1099_v6 = vadd.f32 %v1409_v2, %v1970_v4 }
 0x277   : > { %1576 = vtanh.f32 %v1169_v5  ;;  %v1410_v8 = vpop.f32.mrb[36].mxu0 }
 0x278   : > { %v1172_v7 = vadd.f32 %v1455_v3, %v1099_v6  ;;  %v1456_v9 = vpop.f32.mrb[36].mxu1  ;;  %v1411_v10 = vpop.f32.mrb[37].mxu0 }
 0x279   : > { %v1457_v11 = vpop.f32.mrb[37].mxu1  ;;  %v1573_v12 = vpop.eup %1572  ;;  %v1412_v13 = vadd.f32 %v1411_v10, %v1410_v8 }
 0x27a   : > { %1578 = vtanh.f32 %v1172_v7  ;;  %v1458_v14 = vadd.f32 %v1457_v11, %v1456_v9  ;;  %v1413_v15 = vpop.f32.mrb[38].mxu0  ;;  %v1459_v16 = vpop.f32.mrb[38].mxu1  ;;  %1197 = vst [vmem:[%s1979_s26 + $0x20] sm:$0xff] %v1573_v12 }
 0x27b   : > { %v1414_v17 = vpop.f32.mrb[39].mxu0  ;;  %v1460_v18 = vpop.f32.mrb[39].mxu1  ;;  %v1104_v20 = vadd.f32 %v1412_v13, %v1970_v4 }
 0x27c   : > { %v1575_v19 = vpop.eup %1574  ;;  %v1415_v21 = vadd.f32 %v1414_v17, %v1413_v15  ;;  %v1461_v22 = vadd.f32 %v1460_v18, %v1459_v16 }
 0x27d   : > { %1198 = vst [vmem:[%s1979_s26 + $0x28] sm:$0xff] %v1575_v19  ;;  %v1177_v23 = vadd.f32 %v1458_v14, %v1104_v20 }
 0x27e   : > { %v1107_v24 = vadd.f32 %v1415_v21, %v1970_v4 }
 0x27f   : > { %1580 = vtanh.f32 %v1177_v23 }
 0x280   : > { %v1180_v25 = vadd.f32 %v1461_v22, %v1107_v24 }
 0x281   : > { %v1577_v26 = vpop.eup %1576 }
 0x282   : > { %1582 = vtanh.f32 %v1180_v25  ;;  %1199 = vst [vmem:[%s1979_s26 + $0x30] sm:$0xff] %v1577_v26 }
 0x284   : > { %v1579_v27 = vpop.eup %1578 }
 0x285   : > { %1200 = vst [vmem:[%s1979_s26 + $0x38] sm:$0xff] %v1579_v27 }
 0x289   : > { %v1581_v28 = vpop.eup %1580 }
 0x28a   : > { %1201 = vst [vmem:[%s1979_s26 + $0x40] sm:$0xff] %v1581_v28 }
 0x28c   : > { %v1583_v4 = vpop.eup %1582 }
 0x28d   : > { %1202 = vst [vmem:[%s1979_s26 + $0x48] sm:$0xff] %v1583_v4 }
 0x28e   : > { %1597 = shalt.err (!%p1594_p3)
}
 0x28f   : > { %s1598_s16 = scalar_lea.hbm %s2000_s12, 1280  ;;  %s1602_s30 = scalar_lea.hbm %s2054_s5, 2560 }
 0x290   : > { %p1599_p4 = scmp.ne.s32.totalorder %s2000_s12, %s1598_s16  ;;  %p1603_p9 = scmp.lt.u32.totalorder %s2000_s12, %s2054_s5 }
 0x291   : > { %p1604_p10 = scmp.lt.u32.totalorder %s1602_s30, %s1598_s16  ;;  %p1606_p12 = scmp.lt.u32.totalorder %s1598_s16, %s2000_s12 }
 0x292   : > { %p1600_p7 = pnand %p1599_p4, %p1721_p5 }
 0x293   : > { %p1605_p11 = por %p1604_p10, %p1603_p9 }
 0x294   : > { %p1601_p8 = pneg %p1600_p7 }
 0x295   : > { %p1607_p13 = por %p1606_p12, %p1605_p11 }
 0x297   : > { %p1608_p0 = pnand %p1607_p13, %p1601_p8 }
 0x299   : > { %1611 = shalt.err (!%p1608_p0)
}
 0x29a   : > { %s1651_s26 = smov 128   ;;  %s1652_s6 = smov 8  }
 0x29b   : > { %1463 = dma.vmem_to_hbm [thread:$0]  (%p1721_p5), %s2002_s8, 1280, %s2000_s12, %s2008_s13, %s1651_s26, %s1651_s26, %s1652_s6  }
 0x29c PF: > { %p1469_p1 = scmp.ge.s32.totalorder %s1646_s21, 2  ;;  %s1232_s9 = sand.u32 1, %s1634_s18  }
 0x29d   : > { %s1233_s11 = scalar_lea.sflag [#allocation3], %s1232_s9 }
 0x29e   : > { %p1466_p2 = pnand %p1469_p1, %p1725_p6 }
 0x2a0   : > { %1629 = dma.done.wait (!%p1466_p2), %s1233_s11, 1280  }
 0x2a1   : > { %1631 = vsyncadd (!%p1466_p2), %s1233_s11, 4294966016  ;;  %p15_p3 = scmp.ge.s32.totalorder %s1708_s24, 4   ;;  %s2057_s18 = smov %s1638_s19 }
 0x2a2   : > { %s2058_s19 = smov %s1642_s20  ;;  %s2059_s20 = smov %s1719_s27 }
 0x2a3   : > { %s2060_s21 = smov %s1708_s24  ;;  %17 = sbr.rel (!%p15_p3) target bundleno = 3 (0x3), region = 78 }
 0x2aa   :  { %1238 = vsyncpa [#allocation3], 1 }
 0x2ab   :  { %1240 = vsyncpa [#allocation3 + $0x1], 1 }

</bundles_post_ra>
